<compile_context>
chip_gen: v6e
topology: v6e:2x2x1
jax: 0.10.0
libtpu: 0.0.40
codegen_flags: <defaults>
</compile_context>

<pallas_src>
import jax
import jax.numpy as jnp
from jax import lax
from jax.experimental import pallas as pl
from jax.experimental.pallas import tpu as pltpu


_OUT_W = 128          # lane-dense output width
_Q1_COL = 0           # q1 lives in output column 0
_Q2_COL = 64          # q2 lives in output column 64
_FUSE_THRESHOLD = 128  # v5e MXU lane width; block-diag hidden fusion only below this


# ----------------------------------------------------------------------------
# Kernel
# ----------------------------------------------------------------------------
def _make_double_q_kernel(n_hidden, fuse_hidden):
    """Twin-Q MLP kernel.

    Ref order:
      sa_ref                                     # (TB, S+A)
      w1_ref, b1_ref                             # (S+A, 2H1), (1, 2H1)
      hidden layers (n_hidden of them):
        fused:    w_j, b_j                       # block-diag (2in, 2out), (1, 2out)
        de-fused: w1_j, b1_j, w2_j, b2_j         # per-network (in, out), (1, out)
      wl_ref, bl_ref                             # (2, H_last), (2, 1) final layer
      out_ref                                    # (TB, 128): col 0 = q1, col 64 = q2
    """

    def kernel(*refs):
        sa_ref = refs[0]
        w1_ref, b1_ref = refs[1], refs[2]
        step = 2 if fuse_hidden else 4
        mid_refs = refs[3:3 + step * n_hidden]
        wl_ref = refs[3 + step * n_hidden]
        bl_ref = refs[4 + step * n_hidden]
        out_ref = refs[-1]

        sa = sa_ref[...].astype(jnp.float32)

        # Layer 1 for BOTH networks in one matmul: (TB, S+A) @ (S+A, 2H1).
        h = jnp.dot(sa, w1_ref[...], preferred_element_type=jnp.float32) + b1_ref[...]
        h = jnp.maximum(h, 0.0)

        if fuse_hidden:
            # Small widths (2H <= 128): block-diagonal hidden layers are free.
            for j in range(n_hidden):
                w = mid_refs[2 * j][...]
                b = mid_refs[2 * j + 1][...]
                h = jnp.maximum(
                    jnp.dot(h, w, preferred_element_type=jnp.float32) + b, 0.0)
            h_last = wl_ref.shape[1]
            h1 = h[:, :h_last]
            h2 = h[:, h_last:]
        else:
            # Production widths: split once at a 128-lane boundary and run two
            # per-network matmuls (half the MXU pushes of a block-diag layer).
            h1w = w1_ref.shape[1] // 2
            h1 = h[:, :h1w]
            h2 = h[:, h1w:]
            for j in range(n_hidden):
                wa = mid_refs[4 * j][...]
                ba = mid_refs[4 * j + 1][...]
                wb = mid_refs[4 * j + 2][...]
                bb = mid_refs[4 * j + 3][...]
                h1 = jnp.maximum(
                    jnp.dot(h1, wa, preferred_element_type=jnp.float32) + ba, 0.0)
                h2 = jnp.maximum(
                    jnp.dot(h2, wb, preferred_element_type=jnp.float32) + bb, 0.0)

        # Final (H_last -> 1) layer per network on VPU + lane reduction (XLU):
        # avoids an N=2 MXU matmul entirely.
        q1 = jnp.sum(h1 * wl_ref[0:1, :], axis=-1, keepdims=True) + bl_ref[0:1, :]
        q2 = jnp.sum(h2 * wl_ref[1:2, :], axis=-1, keepdims=True) + bl_ref[1:2, :]

        # Lane-dense (TB, 128) output -> unmasked stores; sliced after the call.
        col = lax.broadcasted_iota(jnp.int32, out_ref.shape, 1)
        out = jnp.where(col == _Q1_COL, q1, 0.0) + jnp.where(col == _Q2_COL, q2, 0.0)
        out_ref[...] = out.astype(out_ref.dtype)

    return kernel


# ----------------------------------------------------------------------------
# Parameter preparation (done once, outside the hot path)
# ----------------------------------------------------------------------------
def init_mlp_params(key, layer_shape):
    """Deterministic PyTorch-style init; weights stored as (in, out)."""
    params = []
    for j in range(len(layer_shape) - 1):
        fan_in, fan_out = layer_shape[j], layer_shape[j + 1]
        key, kw, kb = jax.random.split(key, 3)
        bound = 1.0 / (fan_in ** 0.5)
        w = jax.random.uniform(kw, (fan_in, fan_out), jnp.float32, -bound, bound)
        b = jax.random.uniform(kb, (1, fan_out), jnp.float32, -bound, bound)
        params.append((w, b))
    return params, key


def _block_diag(wa, wb):
    ia, oa = wa.shape
    ib, ob = wb.shape
    top = jnp.concatenate([wa, jnp.zeros((ia, ob), wa.dtype)], axis=1)
    bot = jnp.concatenate([jnp.zeros((ib, oa), wb.dtype), wb], axis=1)
    return jnp.concatenate([top, bot], axis=0)


def prepare_double_q_params(params_q1, params_q2, fuse_threshold=_FUSE_THRESHOLD):
    """Fuse the twin-Q parameter lists into the kernel's layout (one-time)."""
    assert len(params_q1) == len(params_q2) >= 2
    n_layers = len(params_q1)

    # Layer 1: column-concat -> one (S+A, 2H1) matmul for both networks.
    w1 = jnp.concatenate([params_q1[0][0], params_q2[0][0]], axis=1)
    b1 = jnp.concatenate([params_q1[0][1], params_q2[0][1]], axis=1)

    hid_widths = [params_q1[j][0].shape[1] for j in range(n_layers - 1)]
    fuse_hidden = all(2 * h <= fuse_threshold for h in hid_widths)

    mid = []
    for j in range(1, n_layers - 1):
        wa, ba = params_q1[j]
        wb, bb = params_q2[j]
        if fuse_hidden:
            mid.append((_block_diag(wa, wb), jnp.concatenate([ba, bb], axis=1)))
        else:
            mid.append((wa, ba, wb, bb))

    # Last layer (H_last -> 1): two rows for the in-kernel VPU projection.
    wl = jnp.concatenate([params_q1[-1][0].T, params_q2[-1][0].T], axis=0)  # (2, H_last)
    bl = jnp.concatenate([params_q1[-1][1].reshape(1, 1),
                          params_q2[-1][1].reshape(1, 1)], axis=0)          # (2, 1)

    return {"w1": w1, "b1": b1, "mid": mid, "wl": wl, "bl": bl}


# ----------------------------------------------------------------------------
# Forward pass
# ----------------------------------------------------------------------------
def _choose_batch_tile(B):
    """Batch tile / number of grid steps.

    - B <= 256: whole batch in one block (block dims == full dims).
    - B  > 256: >= 2 grid steps (v7x's second TensorCore gets work), tile
      ~<= 2048 rows to amortize grid-step overhead, rounded up to a multiple
      of 8 -> at most 8*nb rows of padding.
    """
    if B <= 256:
        return B, 1
    target = 2048
    nb = max(2, -(-B // target))
    tb = -(-B // nb)
    tb = ((tb + 7) // 8) * 8
    return tb, nb


@jax.jit
def double_q_forward(state, action, prepared):
    """Returns (q1, q2), each (B, 1), matching Double_Q_Critic.forward."""
    B, S = state.shape
    A = action.shape[1]
    dsa = S + A

    mid = prepared["mid"]
    n_hidden = len(mid)
    fuse_hidden = (len(mid[0]) == 2) if mid else True
    mid_flat = [p for layer in mid for p in layer]

    w1, b1 = prepared["w1"], prepared["b1"]
    wl, bl = prepared["wl"], prepared["bl"]

    # Concatenate once in the wrapper -> single layer-1 matmul in the kernel.
    sa = jnp.concatenate([state, action], axis=1).astype(jnp.float32)

    TB, nb = _choose_batch_tile(B)
    B_pad = TB * nb
    if B_pad != B:
        sa = jnp.pad(sa, ((0, B_pad - B), (0, 0)))

    kernel = _make_double_q_kernel(n_hidden, fuse_hidden)

    def const_spec(x):
        # Same block every grid step -> stays resident in VMEM.
        return pl.BlockSpec(x.shape, lambda i: (0, 0))

    in_specs = ([pl.BlockSpec((TB, dsa), lambda i: (i, 0))]
                + [const_spec(w1), const_spec(b1)]
                + [const_spec(p) for p in mid_flat]
                + [const_spec(wl), const_spec(bl)])
    out_specs = pl.BlockSpec((TB, _OUT_W), lambda i: (i, 0))

    if fuse_hidden:
        mid_w = [layer[0] for layer in mid]
    else:
        mid_w = [layer[0] for layer in mid] + [layer[2] for layer in mid]
    flops = 2 * B_pad * (int(w1.size) + sum(int(w.size) for w in mid_w) + int(wl.size))
    param_bytes = sum(int(p.size) * p.dtype.itemsize
                      for p in [w1, b1, wl, bl] + mid_flat)
    bytes_accessed = param_bytes + B_pad * (dsa + _OUT_W) * 4

    out = pl.pallas_call(
        kernel,
        out_shape=jax.ShapeDtypeStruct((B_pad, _OUT_W), jnp.float32),
        grid=(nb,),
        in_specs=in_specs,
        out_specs=out_specs,
        compiler_params=pltpu.CompilerParams(
            dimension_semantics=("parallel",)),
        cost_estimate=pl.CostEstimate(
            flops=int(flops), transcendentals=0,
            bytes_accessed=int(bytes_accessed)),
    )(sa, w1, b1, *mid_flat, wl, bl)

    q1 = out[:B, _Q1_COL:_Q1_COL + 1]
    q2 = out[:B, _Q2_COL:_Q2_COL + 1]
    return q1, q2


# ----------------------------------------------------------------------------
# Pure-JAX reference (faithful to the PyTorch module)
# ----------------------------------------------------------------------------
def _reference_forward(state, action, params_q1, params_q2):
    sa = jnp.concatenate([state, action], axis=1)

    def mlp(x, params):
        h = x
        for j, (w, b) in enumerate(params):
            h = h @ w + b
            if j < len(params) - 1:
                h = jnp.maximum(h, 0.0)
        return h

    return mlp(sa, params_q1), mlp(sa, params_q2)


if __name__ == "__main__":
    def run_case(key, batch, state_dim, action_dim, hid_shape):
        layers = [state_dim + action_dim] + list(hid_shape) + [1]
        params_q1, key = init_mlp_params(key, layers)
        params_q2, key = init_mlp_params(key, layers)
        key, ks, ka = jax.random.split(key, 3)
        state = jax.random.normal(ks, (batch, state_dim), jnp.float32)
        action = jax.random.normal(ka, (batch, action_dim), jnp.float32)

        prepared = prepare_double_q_params(params_q1, params_q2)
        q1, q2 = double_q_forward(state, action, prepared)
        jax.block_until_ready((q1, q2))

        r1, r2 = _reference_forward(state, action, params_q1, params_q2)
        assert q1.shape == (batch, 1) and q2.shape == (batch, 1)
        assert jnp.allclose(q1, r1, atol=5e-4, rtol=5e-4), float(jnp.max(jnp.abs(q1 - r1)))
        assert jnp.allclose(q2, r2, atol=5e-4, rtol=5e-4), float(jnp.max(jnp.abs(q2 - r2)))
        return key

    key = jax.random.PRNGKey(0)
    # 1) Demo shapes -> fused block-diagonal hidden path (2H <= 128).
    key = run_case(key, 8, 8, 4, (32, 32))
    # 2) Production-style widths -> de-fused per-network hidden matmuls.
    key = run_case(key, 8, 8, 4, (128, 128))
    # 3) Multi-block batch grid with tail padding (and no middle hidden layer).
    key = run_case(key, 260, 8, 4, (64,))

    print("KERNEL_OK")
</pallas_src>

<mosaic_0001>
module attributes {stable_mosaic.version = 11 : i64} {
  func.func @kernel(%arg0: i32, %arg1: memref<8x12xf32, #tpu.memory_space<vmem>>, %arg2: memref<12x64xf32, #tpu.memory_space<vmem>>, %arg3: memref<1x64xf32, #tpu.memory_space<vmem>>, %arg4: memref<64x64xf32, #tpu.memory_space<vmem>>, %arg5: memref<1x64xf32, #tpu.memory_space<vmem>>, %arg6: memref<2x32xf32, #tpu.memory_space<vmem>>, %arg7: memref<2x1xf32, #tpu.memory_space<vmem>>, %arg8: memref<8x128xf32, #tpu.memory_space<vmem>>) attributes {dimension_semantics = [#tpu.dimension_semantics<parallel>], iteration_bounds = array<i64: 1>, scalar_prefetch = 0 : i64, scratch_operands = 0 : i64, tpu.core_type = #tpu.core_type<tc>, window_params = [{transform_indices = @transform_0, window_bounds = array<i64: 8, 12>}, {pipeline_mode = #tpu.pipeline_mode<synchronous>, transform_indices = @transform_1, window_bounds = array<i64: 12, 64>}, {pipeline_mode = #tpu.pipeline_mode<synchronous>, transform_indices = @transform_2, window_bounds = array<i64: 1, 64>}, {pipeline_mode = #tpu.pipeline_mode<synchronous>, transform_indices = @transform_3, window_bounds = array<i64: 64, 64>}, {pipeline_mode = #tpu.pipeline_mode<synchronous>, transform_indices = @transform_4, window_bounds = array<i64: 1, 64>}, {pipeline_mode = #tpu.pipeline_mode<synchronous>, transform_indices = @transform_5, window_bounds = array<i64: 2, 32>}, {pipeline_mode = #tpu.pipeline_mode<synchronous>, transform_indices = @transform_6, window_bounds = array<i64: 2, 1>}, {transform_indices = @transform_7, window_bounds = array<i64: 8, 128>}]} {
    %c0 = arith.constant 0 : index
    %c0_0 = arith.constant 0 : index
    %0 = vector.load %arg1[%c0, %c0_0] : memref<8x12xf32, #tpu.memory_space<vmem>>, vector<8x12xf32>
    %c0_1 = arith.constant 0 : index
    %c0_2 = arith.constant 0 : index
    %1 = vector.load %arg2[%c0_1, %c0_2] : memref<12x64xf32, #tpu.memory_space<vmem>>, vector<12x64xf32>
    %cst = arith.constant dense<0.000000e+00> : vector<8x64xf32>
    %2 = tpu.matmul %0, %1, %cst {dimension_numbers = #tpu.dot_dimension_numbers<[1], [0], [0], [1], [0, 0, 1, 1], [], []>} : vector<8x12xf32>, vector<12x64xf32>, vector<8x64xf32> -> vector<8x64xf32>
    %c0_3 = arith.constant 0 : index
    %c0_4 = arith.constant 0 : index
    %3 = vector.load %arg3[%c0_3, %c0_4] : memref<1x64xf32, #tpu.memory_space<vmem>>, vector<1x64xf32>
    %4 = vector.broadcast %3 : vector<1x64xf32> to vector<8x64xf32>
    %5 = arith.addf %2, %4 : vector<8x64xf32>
    %cst_5 = arith.constant 0.000000e+00 : f32
    %6 = vector.broadcast %cst_5 : f32 to vector<8x64xf32>
    %7 = arith.maximumf %5, %6 : vector<8x64xf32>
    %c0_6 = arith.constant 0 : index
    %c0_7 = arith.constant 0 : index
    %8 = vector.load %arg4[%c0_6, %c0_7] : memref<64x64xf32, #tpu.memory_space<vmem>>, vector<64x64xf32>
    %c0_8 = arith.constant 0 : index
    %c0_9 = arith.constant 0 : index
    %9 = vector.load %arg5[%c0_8, %c0_9] : memref<1x64xf32, #tpu.memory_space<vmem>>, vector<1x64xf32>
    %cst_10 = arith.constant dense<0.000000e+00> : vector<8x64xf32>
    %10 = tpu.matmul %7, %8, %cst_10 {dimension_numbers = #tpu.dot_dimension_numbers<[1], [0], [0], [1], [0, 0, 1, 1], [], []>} : vector<8x64xf32>, vector<64x64xf32>, vector<8x64xf32> -> vector<8x64xf32>
    %11 = vector.broadcast %9 : vector<1x64xf32> to vector<8x64xf32>
    %12 = arith.addf %10, %11 : vector<8x64xf32>
    %cst_11 = arith.constant 0.000000e+00 : f32
    %13 = vector.broadcast %cst_11 : f32 to vector<8x64xf32>
    %14 = arith.maximumf %12, %13 : vector<8x64xf32>
    %15 = vector.extract_strided_slice %14 {offsets = [0, 0], sizes = [8, 32], strides = [1, 1]} : vector<8x64xf32> to vector<8x32xf32>
    %16 = vector.extract_strided_slice %14 {offsets = [0, 32], sizes = [8, 32], strides = [1, 1]} : vector<8x64xf32> to vector<8x32xf32>
    %c0_12 = arith.constant 0 : index
    %c0_13 = arith.constant 0 : index
    %17 = vector.load %arg6[%c0_12, %c0_13] : memref<2x32xf32, #tpu.memory_space<vmem>>, vector<1x32xf32>
    %18 = vector.broadcast %17 : vector<1x32xf32> to vector<8x32xf32>
    %19 = arith.mulf %15, %18 : vector<8x32xf32>
    %cst_14 = arith.constant dense<0.000000e+00> : vector<8xf32>
    %20 = vector.multi_reduction <add>, %19, %cst_14 [1] : vector<8x32xf32> to vector<8xf32>
    %21 = vector.shape_cast %20 : vector<8xf32> to vector<8x1xf32>
    %c0_15 = arith.constant 0 : index
    %c0_16 = arith.constant 0 : index
    %22 = vector.load %arg7[%c0_15, %c0_16] : memref<2x1xf32, #tpu.memory_space<vmem>>, vector<1x1xf32>
    %23 = vector.broadcast %22 : vector<1x1xf32> to vector<8x1xf32>
    %24 = arith.addf %21, %23 : vector<8x1xf32>
    %c1 = arith.constant 1 : index
    %c0_17 = arith.constant 0 : index
    %25 = vector.load %arg6[%c1, %c0_17] : memref<2x32xf32, #tpu.memory_space<vmem>>, vector<1x32xf32>
    %26 = vector.broadcast %25 : vector<1x32xf32> to vector<8x32xf32>
    %27 = arith.mulf %16, %26 : vector<8x32xf32>
    %cst_18 = arith.constant dense<0.000000e+00> : vector<8xf32>
    %28 = vector.multi_reduction <add>, %27, %cst_18 [1] : vector<8x32xf32> to vector<8xf32>
    %29 = vector.shape_cast %28 : vector<8xf32> to vector<8x1xf32>
    %c1_19 = arith.constant 1 : index
    %c0_20 = arith.constant 0 : index
    %30 = vector.load %arg7[%c1_19, %c0_20] : memref<2x1xf32, #tpu.memory_space<vmem>>, vector<1x1xf32>
    %31 = vector.broadcast %30 : vector<1x1xf32> to vector<8x1xf32>
    %32 = arith.addf %29, %31 : vector<8x1xf32>
    %33 = tpu.iota {dimensions = array<i32: 1>} : vector<8x128xi32>
    %c0_i32 = arith.constant 0 : i32
    %34 = vector.broadcast %c0_i32 : i32 to vector<8x128xi32>
    %35 = arith.cmpi eq, %33, %34 : vector<8x128xi32>
    %cst_21 = arith.constant 0.000000e+00 : f32
    %36 = vector.shape_cast %24 : vector<8x1xf32> to vector<8x1xf32>
    %37 = vector.broadcast %36 : vector<8x1xf32> to vector<8x128xf32>
    %38 = vector.broadcast %cst_21 : f32 to vector<8x128xf32>
    %39 = arith.select %35, %37, %38 : vector<8x128xi1>, vector<8x128xf32>
    %c64_i32 = arith.constant 64 : i32
    %40 = vector.broadcast %c64_i32 : i32 to vector<8x128xi32>
    %41 = arith.cmpi eq, %33, %40 : vector<8x128xi32>
    %cst_22 = arith.constant 0.000000e+00 : f32
    %42 = vector.shape_cast %32 : vector<8x1xf32> to vector<8x1xf32>
    %43 = vector.broadcast %42 : vector<8x1xf32> to vector<8x128xf32>
    %44 = vector.broadcast %cst_22 : f32 to vector<8x128xf32>
    %45 = arith.select %41, %43, %44 : vector<8x128xi1>, vector<8x128xf32>
    %46 = arith.addf %39, %45 : vector<8x128xf32>
    %c0_23 = arith.constant 0 : index
    %c0_24 = arith.constant 0 : index
    %47 = vector.load %arg8[%c0_23, %c0_24] : memref<8x128xf32, #tpu.memory_space<vmem>>, vector<8x128xf32>
    tpu.vector_store %arg8[%c0_23, %c0_24], %46 {strides = array<i32>} : memref<8x128xf32, #tpu.memory_space<vmem>>, vector<8x128xf32>,
    return
  }
  func.func @transform_0(%arg0: i32) -> (i32, i32) {
    %c0_i32 = arith.constant 0 : i32
    %c0_i32_0 = arith.constant 0 : i32
    return %arg0, %c0_i32 : i32, i32
  }
  func.func @transform_1(%arg0: i32) -> (i32, i32) {
    %c0_i32 = arith.constant 0 : i32
    %c0_i32_0 = arith.constant 0 : i32
    %c0_i32_1 = arith.constant 0 : i32
    return %c0_i32, %c0_i32_0 : i32, i32
  }
  func.func @transform_2(%arg0: i32) -> (i32, i32) {
    %c0_i32 = arith.constant 0 : i32
    %c0_i32_0 = arith.constant 0 : i32
    %c0_i32_1 = arith.constant 0 : i32
    return %c0_i32, %c0_i32_0 : i32, i32
  }
  func.func @transform_3(%arg0: i32) -> (i32, i32) {
    %c0_i32 = arith.constant 0 : i32
    %c0_i32_0 = arith.constant 0 : i32
    %c0_i32_1 = arith.constant 0 : i32
    return %c0_i32, %c0_i32_0 : i32, i32
  }
  func.func @transform_4(%arg0: i32) -> (i32, i32) {
    %c0_i32 = arith.constant 0 : i32
    %c0_i32_0 = arith.constant 0 : i32
    %c0_i32_1 = arith.constant 0 : i32
    return %c0_i32, %c0_i32_0 : i32, i32
  }
  func.func @transform_5(%arg0: i32) -> (i32, i32) {
    %c0_i32 = arith.constant 0 : i32
    %c0_i32_0 = arith.constant 0 : i32
    %c0_i32_1 = arith.constant 0 : i32
    return %c0_i32, %c0_i32_0 : i32, i32
  }
  func.func @transform_6(%arg0: i32) -> (i32, i32) {
    %c0_i32 = arith.constant 0 : i32
    %c0_i32_0 = arith.constant 0 : i32
    %c0_i32_1 = arith.constant 0 : i32
    return %c0_i32, %c0_i32_0 : i32, i32
  }
  func.func @transform_7(%arg0: i32) -> (i32, i32) {
    %c0_i32 = arith.constant 0 : i32
    %c0_i32_0 = arith.constant 0 : i32
    return %arg0, %c0_i32 : i32, i32
  }
}

</mosaic_0001>

<bundles_post_ra>
// kernel: double_q_forward.1
= control target key start
LH: loop header
LB: loop body
LE: loop exit
PB: predicated region body
PF: predicated region fallthrough
CT: control target
= control target key end

     0   :  { %12 = vsyncpa [#allocation3], 0  ;;  %s360_s24 = smov [#allocation2]   ;;  %s441_s0 = inlined_call_operand.vmem [shape: f32[8,12], index: 0, kind: input, shape index: {}]   ;;  %s442_s1 = inlined_call_operand.vmem [shape: f32[12,64], index: 1, kind: input, shape index: {}]   ;;  %s443_s2 = inlined_call_operand.vmem [shape: f32[1,64], index: 2, kind: input, shape index: {}]   ;;  %s444_s3 = inlined_call_operand.hbm [shape: f32[64,64], index: 3, kind: input, shape index: {}]   ;;  %s445_s4 = inlined_call_operand.vmem [shape: f32[1,64], index: 4, kind: input, shape index: {}]   ;;  %s446_s5 = inlined_call_operand.vmem [shape: f32[2,32], index: 5, kind: input, shape index: {}]   ;;  %s447_s6 = inlined_call_operand.vmem [shape: f32[2,1], index: 6, kind: input, shape index: {}]   ;;  %s448_s7 = inlined_call_operand.vmem [shape: f32[8,128], index: 7, kind: output, shape index: {}]  }
   0x1   :  { %s24_s25 = sshll.u32 %s360_s24, 4  ;;  %s25_s25 = int_to_ptr.vmem [resolvable:$true] %s24_s25 }
   0x2   :  { %s346_s26 = scalar_lea.vmem %s25_s25, 1024  ;;  %p351_p1 = scmp.lt.s32.totalorder %s25_s25, %s25_s25 }
   0x3   :  { %p347_p0 = scmp.ne.s32.totalorder %s25_s25, %s346_s26  ;;  %p352_p2 = scmp.lt.s32.totalorder %s346_s26, %s346_s26 }
   0x5   :  { %p353_p3 = por %p352_p2, %p351_p1 }
   0x7   :  { %p354_p4 = pnand %p353_p3, %p347_p0 }
   0x9   :  { %357 = shalt.err (!%p354_p4)
}
   0xa   :  { %s361_s27 = smov 128   ;;  %s362_s28 = smov 8  }
   0xb   :  { %30 = dma.hbm_to_vmem [thread:$0]  %s444_s3, 1024, %s25_s25, [#allocation3], %s361_s27, %s361_s27, %s362_s28  }
   0xc   :  { %358 = dma.done.wait [#allocation3], 1024  }
   0xd   :  { %359 = vsyncadd [#allocation3], 4294966272  ;;  %v363_v0 = vmov 0.0   ;;  %vm364_vm0 = vmmov 0   ;;  %vm54_vm1 = vcmask 1043456   ;;  %v41_v2 = vld [vmem:[%s442_s1] sm:$0xff]  ;;  %v258_v37 = vlaneseq }
   0xe   :  { %302 = vmatprep.subr.mxu0 %v363_v0  ;;  %306 = vmatprep.mubr.msk.f32.mxu0 %vm364_vm0, %v363_v0  ;;  %v42_v1 = vld [vmem:[%s442_s1 + $0x8] sm:$0xf]  ;;  %v40_v3 = vld [vmem:[%s441_s0] sm:$0xff]  ;;  %vm50_vm2 = vcmask 97280   ;;  %v136_v4 = vld [vmem:[#allocation2 + $0x38] sm:$0xff]  ;;  %s365_s13 = smov 32  }
   0xf   :  { %309 = vmatprep.subr.mxu1 %v363_v0  ;;  %325 = vmatprep.mubr.msk.f32.mxu1 %vm364_vm0, %v363_v0  ;;  %v135_v5 = vld [vmem:[#allocation2 + $0x30] sm:$0xff]  ;;  %v134_v6 = vld [vmem:[#allocation2 + $0x28] sm:$0xff]  ;;  %v133_v7 = vld [vmem:[#allocation2 + $0x20] sm:$0xff]  ;;  %vm144_vm3 = vcmask 523264   ;;  %vm225_vm4 = vcmask 261120   ;;  %v367_v28 = vmov 0  }
  0x10   :  { %303 = vmatpush3.msk.msra.mxu0 %vm54_vm1, %v42_v1  ;;  %310 = vmatpush3.msra.mxu1 %v136_v4  ;;  %v132_v8 = vld [vmem:[#allocation2 + $0x18] sm:$0xff]  ;;  %v131_v9 = vld [vmem:[#allocation2 + $0x10] sm:$0xff]  ;;  %v130_v10 = vld [vmem:[#allocation2 + $0x8] sm:$0xff]  ;;  %v259_v38 = vand.u32 127, %v258_v37 }
  0x11   :  { %304 = vmatprep.subr.mxu0 %v363_v0  ;;  %311 = vmatprep.subr.mxu1 %v363_v0  ;;  %v129_v11 = vld [vmem:[#allocation2] sm:$0xff] }
  0x12   :  { %305 = vmatpush3.msra.mxu0 %v41_v2  ;;  %312 = vmatpush3.msra.mxu1 %v135_v5  ;;  %v288_v12 = vld [vmem:[%s446_s5 + $0x1] ss:$0 sm:$0xff]  ;;  %v281_v13 = vld [vmem:[%s443_s2] ss:$0 sm:$0xff]  ;;  %s366_s2 = smov 96   ;;  %vm260_vm5 = vcmp.eq.s32.totalorder %v259_v38, 0 }
  0x13   :  { %307 = vmatmul.mubr.msk.f32.vlgmr.msra.gmra.mxu0 %vm50_vm2, %v40_v3  ;;  %313 = vmatprep.subr.mxu1 %v363_v0  ;;  %v284_v18 = vld [vmem:[%s445_s4] ss:$0 sm:$0xff]  ;;  %v289_v34 = vld [vmem:[%s447_s6 + $0x1] ss:$0 sm:$0xff]  ;;  %vm267_vm6 = vcmp.eq.s32.totalorder %v259_v38, 64 }
  0x14   :  { %314 = vmatpush3.msra.mxu1 %v134_v6  ;;  %241 = vrot.lane.b32.xlu0 %v288_v12, %s365_s13  ;;  %v286_v23 = vld [vmem:[%s446_s5] ss:$0 sm:$0xff] }
  0x15   :  { %315 = vmatprep.subr.mxu1 %v363_v0  ;;  %336 = vset.pattern.permute.xlu0 %v367_v28  ;;  %v287_v31 = vld [vmem:[%s447_s6] ss:$0 sm:$0xff] }
  0x16   :  { %316 = vmatpush3.msra.mxu1 %v133_v7  ;;  %337 = vset.pattern.permute.xlu1 %v367_v28 }
  0x17   :  { %317 = vmatprep.subr.mxu1 %v363_v0 }
  0x18   :  { %318 = vmatpush3.msra.mxu1 %v132_v8 }
  0x19   :  { %319 = vmatprep.subr.mxu1 %v363_v0 }
  0x1a   :  { %320 = vmatpush3.msra.mxu1 %v131_v9 }
  0x1b   :  { %321 = vmatprep.subr.mxu1 %v363_v0 }
  0x1c   :  { %322 = vmatpush3.msra.mxu1 %v130_v10 }
  0x1d   :  { %323 = vmatprep.subr.mxu1 %v363_v0 }
  0x1e   :  { %324 = vmatpush3.msra.mxu1 %v129_v11 }
  0x86   :  { %v242_v22 = vpop.permute.xlu0 %241 }
  0xd3   :  { %v124_v14 = vpop.f32.mrf.mxu0 }
  0xd4   :  { %v125_v15 = vadd.f32 %v281_v13, %v124_v14 }
  0xd5   :  { %v308_v16 = vpop.f32.mrf.mxu0 }
  0xd6   :  { %v128_v17 = vmax.f32 %v125_v15, 0.0 }
  0xd8   :  { %326 = vmatmul.mubr.msk.f32.vlgmr.msra.gmra.mxu1 %vm144_vm3, %v128_v17 }
 0x198   :  { %v214_v19 = vpop.f32.mrf.mxu1 }
 0x199   :  { %v215_v20 = vadd.f32 %v284_v18, %v214_v19 }
 0x19a   :  { %v327_v21 = vpop.f32.mrf.mxu1 }
 0x19b   :  { %v218_v24 = vmax.f32 %v215_v20, 0.0 }
 0x19d   :  { %v244_v25 = vmul.f32 %v242_v22, %v218_v24  ;;  %v224_v26 = vmul.f32 %v286_v23, %v218_v24 }
 0x19f   :  { %246 = vrot.lane.b32.xlu0 %v244_v25, %s366_s2  ;;  %v226_v27 = vsel %vm225_vm4, %v224_v26, 0.0 }
 0x1a0   :  { %227 = vadd.xlane.f32.xlu1 %v226_v27 }
 0x211   :  { %v247_v29 = vpop.permute.xlu0 %246 }
 0x212   :  { %v249_v30 = vsel %vm225_vm4, %v247_v29, 0.0 }
 0x213   :  { %250 = vadd.xlane.f32.xlu1 %v249_v30 }
 0x229   :  { %v228_v32 = vpop.xlane.xlu1 %227 }
 0x22a   :  { %v234_v33 = vadd.f32 %v287_v31, %v228_v32 }
 0x22c   :  { %263 = vperm.xlu0 %336, %v234_v33  }
 0x29c   :  { %v251_v35 = vpop.xlane.xlu1 %250 }
 0x29d   :  { %v257_v36 = vadd.f32 %v289_v34, %v251_v35 }
 0x29f   :  { %270 = vperm.xlu1 %337, %v257_v36  }
 0x2a7   :  { %v264_v39 = vpop.permute.xlu0 %263 }
 0x2a8   :  { %v266_v41 = vsel %vm260_vm5, %v264_v39, 0.0 }
 0x31a   :  { %v271_v40 = vpop.permute.xlu1 %270 }
 0x31b   :  { %v273_v42 = vsel %vm267_vm6, %v271_v40, 0.0 }
 0x31c   :  { %v274_v43 = vadd.f32 %v273_v42, %v266_v41 }
 0x31e   :  { %275 = vst [vmem:[%s448_s7] sm:$0xff] %v274_v43 }
 0x31f   :  { %280 = vsyncpa [#allocation3], 1 }

</bundles_post_ra>
